<compile_context>
chip_gen: v7x
topology: tpu7x:2x2x1
jax: 0.10.0
libtpu: 0.0.40
codegen_flags: <defaults>
</compile_context>

<pallas_src>
import functools

import jax
import jax.numpy as jnp
from jax.experimental import pallas as pl
from jax.experimental.pallas import tpu as pltpu


# --------------------------------------------------------------------------
# Kernels
# --------------------------------------------------------------------------

def _fused_kernel(x1_ref, x2_ref, w1_ref, w2_ref, bias_ref,
                  wse1_ref, wse2_ref, out_ref):
    """Single-pass kernel: one batch element, full HW resident in VMEM.

    x1_ref: (1, C1, HW)   x2_ref: (1, C2, HW)
    w1_ref: (Cout, C1)    w2_ref: (Cout, C2)   (BN scale pre-folded)
    bias_ref: (Cout, 1)
    wse1_ref: (Cmid, Cout) wse2_ref: (Cout, Cmid)
    out_ref: (1, Cout, HW)
    """
    x1 = x1_ref[0]                                             # (C1, HW)
    x2 = x2_ref[0]                                             # (C2, HW)

    # 1x1 conv over concatenated channels == sum of two matmuls (f32 accum).
    conv = (jnp.dot(w1_ref[...], x1, preferred_element_type=jnp.float32)
            + jnp.dot(w2_ref[...], x2, preferred_element_type=jnp.float32))
    fm = jnp.maximum(conv + bias_ref[...], 0.0)                # (Cout, HW) f32

    # Global average pool: lane-axis reduction (XLU) + constant multiply.
    inv_hw = jnp.float32(1.0 / fm.shape[-1])
    pooled = jnp.sum(fm, axis=-1, keepdims=True) * inv_hw      # (Cout, 1)

    # Channel attention (SE): two tiny matmuls + sigmoid (EUP).
    h = jnp.maximum(
        jnp.dot(wse1_ref[...], pooled, preferred_element_type=jnp.float32), 0.0)
    se = jax.nn.sigmoid(
        jnp.dot(wse2_ref[...], h, preferred_element_type=jnp.float32))   # (Cout, 1)

    # out = fm + fm * se == fm * (1 + se), broadcast over the lane (HW) axis.
    out_ref[0] = (fm * (1.0 + se)).astype(out_ref.dtype)


def _pass1_kernel(x1_ref, x2_ref, w1_ref, w2_ref, bias_ref, fm_ref, psum_ref):
    """HW-tiled pass 1: conv + bias + ReLU tile, accumulate channel pool sums.

    x1_ref: (1, C1, T)  x2_ref: (1, C2, T)  fm_ref: (1, Cout, T)
    psum_ref: (1, Cout, 1) -- resident across the HW grid axis (accumulator).
    """
    conv = (jnp.dot(w1_ref[...], x1_ref[0], preferred_element_type=jnp.float32)
            + jnp.dot(w2_ref[...], x2_ref[0], preferred_element_type=jnp.float32))
    fm = jnp.maximum(conv + bias_ref[...], 0.0)                # (Cout, T) f32
    fm_ref[0] = fm.astype(fm_ref.dtype)

    @pl.when(pl.program_id(1) == 0)
    def _init():
        psum_ref[...] = jnp.zeros_like(psum_ref)

    psum_ref[0] += jnp.sum(fm, axis=-1, keepdims=True)


def _pass2_kernel(pool_ref, wse1_ref, wse2_ref, fm_ref, out_ref):
    """HW-tiled pass 2: apply (1 + sigmoid(SE(pool))) channel gate per tile."""
    p = pool_ref[0]                                            # (Cout, 1), mean
    h = jnp.maximum(
        jnp.dot(wse1_ref[...], p, preferred_element_type=jnp.float32), 0.0)
    se = jax.nn.sigmoid(
        jnp.dot(wse2_ref[...], h, preferred_element_type=jnp.float32))   # (Cout, 1)
    out_ref[0] = (fm_ref[0].astype(jnp.float32) * (1.0 + se)).astype(out_ref.dtype)


# --------------------------------------------------------------------------
# Wrapper
# --------------------------------------------------------------------------

_VMEM_TARGET = 20 * 1024 * 1024      # conservative per-step data budget (v7x-safe)


def _auto_hw_tile(hw, c1, c2, cout, mm_bytes):
    """Return None (single fused pass) or an HW tile (multiple of 128, divides HW)."""
    # double-buffered inputs + fm output + f32 fm live in registers/VMEM
    per_col = 2 * ((c1 + c2) * mm_bytes + cout * 4) + cout * 4
    if hw * per_col <= _VMEM_TARGET:
        return None
    tile = (_VMEM_TARGET // per_col) // 128 * 128
    while tile >= 128:
        if hw % tile == 0:
            return int(tile)
        tile -= 128
    # TODO(synk): ragged HW tiling (HW not a multiple of 128) -- fall back to fused.
    return None


def _vmem_limit(per_step_bytes):
    """Explicit scoped-VMEM limit only when blocks grow; cap under v7x's 64 MiB."""
    if per_step_bytes <= 8 * 1024 * 1024:
        return None
    return int(min(2 * per_step_bytes + (2 << 20), 56 * 1024 * 1024))


def feature_fusion(x1_nchw, x2_nchw, params, *, hw_tile=None, mm_dtype=None):
    """x1_nchw: (N, C1, H, W), x2_nchw: (N, C2, H, W) -> (N, Cout, H, W).

    params = (w1, w2, bn_scale, bn_bias, wse1, wse2) with weights in the
    x-@-W orientation: w1 (C1, Cout), w2 (C2, Cout), wse1 (Cout, Cmid),
    wse2 (Cmid, Cout); bn_* are the folded inference-mode BN scale/bias.

    hw_tile: force the HW-tiled two-pass path with this tile (multiple of 128
             dividing H*W).  Default: auto (fused path at small footprints).
    mm_dtype: optional dtype (e.g. jnp.bfloat16) for the big conv matmul
              inputs; accumulation and elementwise math stay in f32.
    """
    w1, w2, bn_scale, bn_bias, wse1, wse2 = params
    N, C1, H, W = x1_nchw.shape
    C2 = x2_nchw.shape[1]
    Cout = w1.shape[1]
    Cmid = wse1.shape[1]
    HW = H * W
    out_dtype = x1_nchw.dtype

    # NCHW -> (N, C, HW): a free reshape of contiguous NCHW (no transpose).
    x1 = x1_nchw.reshape(N, C1, HW)
    x2 = x2_nchw.reshape(N, C2, HW)

    # Fold BN scale into the conv weights; transpose to (Cout, Cin) for
    # W @ X in the channels-on-sublane / HW-on-lane layout.
    w1t = jnp.transpose(w1 * bn_scale[None, :])                # (Cout, C1)
    w2t = jnp.transpose(w2 * bn_scale[None, :])                # (Cout, C2)
    bias = bn_bias.reshape(Cout, 1).astype(jnp.float32)
    wse1t = jnp.transpose(wse1).astype(jnp.float32)            # (Cmid, Cout)
    wse2t = jnp.transpose(wse2).astype(jnp.float32)            # (Cout, Cmid)

    if mm_dtype is not None:                                   # bf16 MXU inputs (v6e/v7x)
        x1 = x1.astype(mm_dtype)
        x2 = x2.astype(mm_dtype)
        w1t = w1t.astype(mm_dtype)
        w2t = w2t.astype(mm_dtype)
    mm_bytes = jnp.dtype(x1.dtype).itemsize

    if hw_tile is None:
        hw_tile = _auto_hw_tile(HW, C1, C2, Cout, mm_bytes)

    # ---------------- fused single-pass path ----------------
    if hw_tile is None:
        step_bytes = 2 * ((C1 + C2) * HW * mm_bytes + Cout * HW * 4) + Cout * HW * 4
        out = pl.pallas_call(
            _fused_kernel,
            out_shape=jax.ShapeDtypeStruct((N, Cout, HW), out_dtype),
            grid_spec=pltpu.PrefetchScalarGridSpec(
                num_scalar_prefetch=0,
                grid=(N,),
                in_specs=[
                    pl.BlockSpec((1, C1, HW), lambda b: (b, 0, 0)),
                    pl.BlockSpec((1, C2, HW), lambda b: (b, 0, 0)),
                    pl.BlockSpec((Cout, C1), lambda b: (0, 0)),
                    pl.BlockSpec((Cout, C2), lambda b: (0, 0)),
                    pl.BlockSpec((Cout, 1), lambda b: (0, 0)),
                    pl.BlockSpec((Cmid, Cout), lambda b: (0, 0)),
                    pl.BlockSpec((Cout, Cmid), lambda b: (0, 0)),
                ],
                out_specs=pl.BlockSpec((1, Cout, HW), lambda b: (b, 0, 0)),
            ),
            compiler_params=pltpu.CompilerParams(
                dimension_semantics=("parallel",),
                vmem_limit_bytes=_vmem_limit(step_bytes)),
        )(x1, x2, w1t, w2t, bias, wse1t, wse2t)
        return out.reshape(N, Cout, H, W)

    # ---------------- HW-tiled two-pass path (large maps / v7x VMEM) ----------------
    assert HW % hw_tile == 0 and hw_tile % 128 == 0, "hw_tile must be a 128-multiple dividing H*W"
    n_hw = HW // hw_tile
    step1_bytes = 2 * ((C1 + C2) * hw_tile * mm_bytes + Cout * hw_tile * 4) + Cout * hw_tile * 4
    step2_bytes = 4 * Cout * hw_tile * 4

    fm, psum = pl.pallas_call(
        _pass1_kernel,
        out_shape=(jax.ShapeDtypeStruct((N, Cout, HW), jnp.float32),
                   jax.ShapeDtypeStruct((N, Cout, 1), jnp.float32)),
        grid_spec=pltpu.PrefetchScalarGridSpec(
            num_scalar_prefetch=0,
            grid=(N, n_hw),
            in_specs=[
                pl.BlockSpec((1, C1, hw_tile), lambda b, t: (b, 0, t)),
                pl.BlockSpec((1, C2, hw_tile), lambda b, t: (b, 0, t)),
                pl.BlockSpec((Cout, C1), lambda b, t: (0, 0)),
                pl.BlockSpec((Cout, C2), lambda b, t: (0, 0)),
                pl.BlockSpec((Cout, 1), lambda b, t: (0, 0)),
            ],
            out_specs=(
                pl.BlockSpec((1, Cout, hw_tile), lambda b, t: (b, 0, t)),
                pl.BlockSpec((1, Cout, 1), lambda b, t: (b, 0, 0)),   # pool accumulator
            ),
        ),
        compiler_params=pltpu.CompilerParams(
            dimension_semantics=("parallel", "arbitrary"),
            vmem_limit_bytes=_vmem_limit(step1_bytes)),
    )(x1, x2, w1t, w2t, bias)

    pooled = psum * jnp.float32(1.0 / HW)                      # tiny (N, Cout, 1) op

    out = pl.pallas_call(
        _pass2_kernel,
        out_shape=jax.ShapeDtypeStruct((N, Cout, HW), out_dtype),
        grid_spec=pltpu.PrefetchScalarGridSpec(
            num_scalar_prefetch=0,
            grid=(N, n_hw),
            in_specs=[
                pl.BlockSpec((1, Cout, 1), lambda b, t: (b, 0, 0)),
                pl.BlockSpec((Cmid, Cout), lambda b, t: (0, 0)),
                pl.BlockSpec((Cout, Cmid), lambda b, t: (0, 0)),
                pl.BlockSpec((1, Cout, hw_tile), lambda b, t: (b, 0, t)),
            ],
            out_specs=pl.BlockSpec((1, Cout, hw_tile), lambda b, t: (b, 0, t)),
        ),
        compiler_params=pltpu.CompilerParams(
            dimension_semantics=("parallel", "parallel"),
            vmem_limit_bytes=_vmem_limit(step2_bytes)),
    )(pooled, wse1t, wse2t, fm)
    return out.reshape(N, Cout, H, W)


# --------------------------------------------------------------------------
# Parameters / reference
# --------------------------------------------------------------------------

def make_params(key, in_planes, out_planes, reduction=1, bn_eps=1e-5):
    """Deterministic synthetic parameters (module __init__ shapes)."""
    cmid = out_planes // reduction
    k1, k2, k3 = jax.random.split(key, 3)
    # conv_1x1 weight: PyTorch (out, in, 1, 1); stored here as (in, out) for x @ W.
    w_full = jax.random.normal(k1, (in_planes, out_planes), jnp.float32) * 0.1
    # channel attention 1x1 convs (no bias, no BN), stored as (in, out).
    wse1 = jax.random.normal(k2, (out_planes, cmid), jnp.float32) * 0.1
    wse2 = jax.random.normal(k3, (cmid, out_planes), jnp.float32) * 0.1
    # BatchNorm (inference mode), folded to per-channel scale/bias.
    gamma = 1.0 + 0.1 * jnp.arange(out_planes, dtype=jnp.float32)
    beta = 0.01 * jnp.arange(out_planes, dtype=jnp.float32)
    r_mean = 0.05 * jnp.arange(out_planes, dtype=jnp.float32)
    r_var = 1.0 + 0.02 * jnp.arange(out_planes, dtype=jnp.float32)
    scale = gamma / jnp.sqrt(r_var + bn_eps)
    bias = beta - r_mean * scale
    return w_full, wse1, wse2, scale, bias


def reference(x1_nchw, x2_nchw, params):
    """Pure-JAX reference (same inference-mode BN semantics)."""
    w1, w2, scale, bias, wse1, wse2 = params
    w_full = jnp.concatenate([w1, w2], axis=0)
    fm_in = jnp.concatenate([x1_nchw, x2_nchw], axis=1)          # (N, Cin, H, W)
    x = jnp.transpose(fm_in, (0, 2, 3, 1))                       # NHWC
    conv = jnp.einsum("nhwc,co->nhwo", x, w_full)
    fm = jnp.maximum(conv * scale + bias, 0.0)
    pooled = jnp.mean(fm, axis=(1, 2))                           # (N, Cout)
    h = jnp.maximum(pooled @ wse1, 0.0)
    se = jax.nn.sigmoid(h @ wse2)[:, None, None, :]              # (N,1,1,Cout)
    out = fm + fm * se
    return jnp.transpose(out, (0, 3, 1, 2))                      # NCHW


if __name__ == "__main__":
    key = jax.random.PRNGKey(0)
    kx1, kx2, kp = jax.random.split(key, 3)

    N, C_each, H, W = 2, 4, 16, 16            # x1, x2 each (2, 4, 16, 16)
    in_planes = 2 * C_each                     # concat -> 8
    out_planes = 8
    reduction = 1

    x1 = jax.random.normal(kx1, (N, C_each, H, W), jnp.float32)
    x2 = jax.random.normal(kx2, (N, C_each, H, W), jnp.float32)

    w_full, wse1, wse2, bn_scale, bn_bias = make_params(kp, in_planes, out_planes, reduction)
    w1, w2 = w_full[:C_each], w_full[C_each:]
    params = (w1, w2, bn_scale, bn_bias, wse1, wse2)

    ref = reference(x1, x2, params)

    # 1) fused single-pass kernel (fits VMEM at these shapes).
    out = jax.block_until_ready(feature_fusion(x1, x2, params))
    assert out.shape == (N, out_planes, H, W)
    assert jnp.allclose(out, ref, atol=1e-4, rtol=1e-4)

    # 2) HW-tiled two-pass path (the large-feature-map / v7x-VMEM variant), forced.
    out_t = jax.block_until_ready(feature_fusion(x1, x2, params, hw_tile=128))
    assert jnp.allclose(out_t, ref, atol=1e-4, rtol=1e-4)

    # 3) bf16 MXU-input path (v6e/v7x); f32 accumulation + f32 elementwise.
    out_bf = jax.block_until_ready(feature_fusion(x1, x2, params, mm_dtype=jnp.bfloat16))
    assert jnp.allclose(out_bf, ref, atol=5e-2, rtol=5e-2)

    print("KERNEL_OK")
</pallas_src>

<mosaic_0001>
module attributes {stable_mosaic.version = 11 : i64} {
  func.func @_fused_kernel(%arg0: i32, %arg1: memref<1x4x256xf32, #tpu.memory_space<vmem>>, %arg2: memref<1x4x256xf32, #tpu.memory_space<vmem>>, %arg3: memref<8x4xf32, #tpu.memory_space<vmem>>, %arg4: memref<8x4xf32, #tpu.memory_space<vmem>>, %arg5: memref<8x1xf32, #tpu.memory_space<vmem>>, %arg6: memref<8x8xf32, #tpu.memory_space<vmem>>, %arg7: memref<8x8xf32, #tpu.memory_space<vmem>>, %arg8: memref<1x8x256xf32, #tpu.memory_space<vmem>>) attributes {dimension_semantics = [#tpu.dimension_semantics<parallel>], iteration_bounds = array<i64: 2>, scalar_prefetch = 0 : i64, scratch_operands = 0 : i64, tpu.core_type = #tpu.core_type<tc>, window_params = [{transform_indices = @transform_0, window_bounds = array<i64: 1, 4, 256>}, {transform_indices = @transform_1, window_bounds = array<i64: 1, 4, 256>}, {pipeline_mode = #tpu.pipeline_mode<synchronous>, transform_indices = @transform_2, window_bounds = array<i64: 8, 4>}, {pipeline_mode = #tpu.pipeline_mode<synchronous>, transform_indices = @transform_3, window_bounds = array<i64: 8, 4>}, {pipeline_mode = #tpu.pipeline_mode<synchronous>, transform_indices = @transform_4, window_bounds = array<i64: 8, 1>}, {pipeline_mode = #tpu.pipeline_mode<synchronous>, transform_indices = @transform_5, window_bounds = array<i64: 8, 8>}, {pipeline_mode = #tpu.pipeline_mode<synchronous>, transform_indices = @transform_6, window_bounds = array<i64: 8, 8>}, {transform_indices = @transform_7, window_bounds = array<i64: 1, 8, 256>}]} {
    %c0 = arith.constant 0 : index
    %c0_0 = arith.constant 0 : index
    %c0_1 = arith.constant 0 : index
    %0 = vector.load %arg1[%c0, %c0_0, %c0_1] : memref<1x4x256xf32, #tpu.memory_space<vmem>>, vector<1x4x256xf32>
    %1 = vector.shape_cast %0 : vector<1x4x256xf32> to vector<4x256xf32>
    %c0_2 = arith.constant 0 : index
    %c0_3 = arith.constant 0 : index
    %c0_4 = arith.constant 0 : index
    %2 = vector.load %arg2[%c0_2, %c0_3, %c0_4] : memref<1x4x256xf32, #tpu.memory_space<vmem>>, vector<1x4x256xf32>
    %3 = vector.shape_cast %2 : vector<1x4x256xf32> to vector<4x256xf32>
    %c0_5 = arith.constant 0 : index
    %c0_6 = arith.constant 0 : index
    %4 = vector.load %arg3[%c0_5, %c0_6] : memref<8x4xf32, #tpu.memory_space<vmem>>, vector<8x4xf32>
    %cst = arith.constant dense<0.000000e+00> : vector<8x256xf32>
    %5 = tpu.matmul %4, %1, %cst {dimension_numbers = #tpu.dot_dimension_numbers<[1], [0], [0], [1], [0, 0, 1, 1], [], []>} : vector<8x4xf32>, vector<4x256xf32>, vector<8x256xf32> -> vector<8x256xf32>
    %c0_7 = arith.constant 0 : index
    %c0_8 = arith.constant 0 : index
    %6 = vector.load %arg4[%c0_7, %c0_8] : memref<8x4xf32, #tpu.memory_space<vmem>>, vector<8x4xf32>
    %cst_9 = arith.constant dense<0.000000e+00> : vector<8x256xf32>
    %7 = tpu.matmul %6, %3, %cst_9 {dimension_numbers = #tpu.dot_dimension_numbers<[1], [0], [0], [1], [0, 0, 1, 1], [], []>} : vector<8x4xf32>, vector<4x256xf32>, vector<8x256xf32> -> vector<8x256xf32>
    %8 = arith.addf %5, %7 : vector<8x256xf32>
    %c0_10 = arith.constant 0 : index
    %c0_11 = arith.constant 0 : index
    %9 = vector.load %arg5[%c0_10, %c0_11] : memref<8x1xf32, #tpu.memory_space<vmem>>, vector<8x1xf32>
    %10 = vector.broadcast %9 : vector<8x1xf32> to vector<8x256xf32>
    %11 = arith.addf %8, %10 : vector<8x256xf32>
    %cst_12 = arith.constant 0.000000e+00 : f32
    %12 = vector.broadcast %cst_12 : f32 to vector<8x256xf32>
    %13 = arith.maximumf %11, %12 : vector<8x256xf32>
    %cst_13 = arith.constant dense<0.000000e+00> : vector<8xf32>
    %14 = vector.multi_reduction <add>, %13, %cst_13 [1] : vector<8x256xf32> to vector<8xf32>
    %15 = vector.shape_cast %14 : vector<8xf32> to vector<8x1xf32>
    %cst_14 = arith.constant 3.906250e-03 : f32
    %16 = vector.broadcast %cst_14 : f32 to vector<8x1xf32>
    %17 = arith.mulf %15, %16 : vector<8x1xf32>
    %c0_15 = arith.constant 0 : index
    %c0_16 = arith.constant 0 : index
    %18 = vector.load %arg6[%c0_15, %c0_16] : memref<8x8xf32, #tpu.memory_space<vmem>>, vector<8x8xf32>
    %cst_17 = arith.constant dense<0.000000e+00> : vector<8x1xf32>
    %19 = tpu.matmul %18, %17, %cst_17 {dimension_numbers = #tpu.dot_dimension_numbers<[1], [0], [0], [1], [0, 0, 1, 1], [], []>} : vector<8x8xf32>, vector<8x1xf32>, vector<8x1xf32> -> vector<8x1xf32>
    %cst_18 = arith.constant 0.000000e+00 : f32
    %20 = vector.broadcast %cst_18 : f32 to vector<8x1xf32>
    %21 = arith.maximumf %19, %20 : vector<8x1xf32>
    %c0_19 = arith.constant 0 : index
    %c0_20 = arith.constant 0 : index
    %22 = vector.load %arg7[%c0_19, %c0_20] : memref<8x8xf32, #tpu.memory_space<vmem>>, vector<8x8xf32>
    %cst_21 = arith.constant dense<0.000000e+00> : vector<8x1xf32>
    %23 = tpu.matmul %22, %21, %cst_21 {dimension_numbers = #tpu.dot_dimension_numbers<[1], [0], [0], [1], [0, 0, 1, 1], [], []>} : vector<8x8xf32>, vector<8x1xf32>, vector<8x1xf32> -> vector<8x1xf32>
    %24 = arith.negf %23 : vector<8x1xf32>
    %25 = math.exp %24 : vector<8x1xf32>
    %cst_22 = arith.constant 1.000000e+00 : f32
    %26 = vector.broadcast %cst_22 : f32 to vector<8x1xf32>
    %27 = arith.addf %26, %25 : vector<8x1xf32>
    %28 = arith.divf %26, %27 : vector<8x1xf32>
    %cst_23 = arith.constant 1.000000e+00 : f32
    %29 = vector.broadcast %cst_23 : f32 to vector<8x1xf32>
    %30 = arith.addf %29, %28 : vector<8x1xf32>
    %31 = vector.broadcast %30 : vector<8x1xf32> to vector<8x256xf32>
    %32 = arith.mulf %13, %31 : vector<8x256xf32>
    %c0_24 = arith.constant 0 : index
    %c0_25 = arith.constant 0 : index
    %c0_26 = arith.constant 0 : index
    %33 = vector.load %arg8[%c0_24, %c0_25, %c0_26] : memref<1x8x256xf32, #tpu.memory_space<vmem>>, vector<1x8x256xf32>
    %34 = vector.shape_cast %33 : vector<1x8x256xf32> to vector<8x256xf32>
    %35 = vector.shape_cast %32 : vector<8x256xf32> to vector<1x8x256xf32>
    tpu.vector_store %arg8[%c0_24, %c0_25, %c0_26], %35 {strides = array<i32>} : memref<1x8x256xf32, #tpu.memory_space<vmem>>, vector<1x8x256xf32>,
    return
  }
  func.func @transform_0(%arg0: i32) -> (i32, i32, i32) {
    %c0_i32 = arith.constant 0 : i32
    %c0_i32_0 = arith.constant 0 : i32
    %c0_i32_1 = arith.constant 0 : i32
    return %arg0, %c0_i32, %c0_i32_0 : i32, i32, i32
  }
  func.func @transform_1(%arg0: i32) -> (i32, i32, i32) {
    %c0_i32 = arith.constant 0 : i32
    %c0_i32_0 = arith.constant 0 : i32
    %c0_i32_1 = arith.constant 0 : i32
    return %arg0, %c0_i32, %c0_i32_0 : i32, i32, i32
  }
  func.func @transform_2(%arg0: i32) -> (i32, i32) {
    %c0_i32 = arith.constant 0 : i32
    %c0_i32_0 = arith.constant 0 : i32
    %c0_i32_1 = arith.constant 0 : i32
    return %c0_i32, %c0_i32_0 : i32, i32
  }
  func.func @transform_3(%arg0: i32) -> (i32, i32) {
    %c0_i32 = arith.constant 0 : i32
    %c0_i32_0 = arith.constant 0 : i32
    %c0_i32_1 = arith.constant 0 : i32
    return %c0_i32, %c0_i32_0 : i32, i32
  }
  func.func @transform_4(%arg0: i32) -> (i32, i32) {
    %c0_i32 = arith.constant 0 : i32
    %c0_i32_0 = arith.constant 0 : i32
    %c0_i32_1 = arith.constant 0 : i32
    return %c0_i32, %c0_i32_0 : i32, i32
  }
  func.func @transform_5(%arg0: i32) -> (i32, i32) {
    %c0_i32 = arith.constant 0 : i32
    %c0_i32_0 = arith.constant 0 : i32
    %c0_i32_1 = arith.constant 0 : i32
    return %c0_i32, %c0_i32_0 : i32, i32
  }
  func.func @transform_6(%arg0: i32) -> (i32, i32) {
    %c0_i32 = arith.constant 0 : i32
    %c0_i32_0 = arith.constant 0 : i32
    %c0_i32_1 = arith.constant 0 : i32
    return %c0_i32, %c0_i32_0 : i32, i32
  }
  func.func @transform_7(%arg0: i32) -> (i32, i32, i32) {
    %c0_i32 = arith.constant 0 : i32
    %c0_i32_0 = arith.constant 0 : i32
    %c0_i32_1 = arith.constant 0 : i32
    return %arg0, %c0_i32, %c0_i32_0 : i32, i32, i32
  }
}

</mosaic_0001>

<bundles_post_ra>
// kernel: tpu_custom_call.1
= control target key start
LH: loop header
LB: loop body
LE: loop exit
PB: predicated region body
PF: predicated region fallthrough
CT: control target
= control target key end

     0   :  { %12 = vsyncpa [#allocation3], 0  ;;  %s1047_s0 = inlined_call_operand.vmem [shape: f32[2,4,256], index: 0, kind: input, shape index: {}]   ;;  %s1048_s1 = inlined_call_operand.vmem [shape: f32[2,4,256], index: 1, kind: input, shape index: {}]   ;;  %s1049_s2 = inlined_call_operand.vmem [shape: f32[8,4], index: 2, kind: input, shape index: {}]   ;;  %s1050_s3 = inlined_call_operand.vmem [shape: f32[8,4], index: 3, kind: input, shape index: {}]   ;;  %s1051_s4 = inlined_call_operand.vmem [shape: f32[8,1], index: 4, kind: input, shape index: {}]   ;;  %s1052_s5 = inlined_call_operand.vmem [shape: f32[8,8], index: 5, kind: input, shape index: {}]   ;;  %s1053_s6 = inlined_call_operand.vmem [shape: f32[8,8], index: 6, kind: input, shape index: {}]   ;;  %s1054_s7 = inlined_call_operand.hbm [shape: f32[2,8,256], index: 7, kind: output, shape index: {}]  }
   0x1   :  { %14 = vsyncpa [#allocation3 + $0x1], 0  ;;  %s929_s24 = smov 0   ;;  %s931_s25 = smov 0  }
   0x2   :  { %s933_s26 = smov 0   ;;  %s935_s27 = smov 0  }
   0x3 LB: > { %s950_s28 = sadd.s32 4294967295, %s883_s27   ;;  %s729_s29 = sadd.s32 4294967294, %s883_s27   ;;  %s883_s27 = sphi %s935_s27, %s1060_s27   ;;  %s879_s26 = sphi %s933_s26, %s1059_s26   ;;  %s875_s25 = sphi %s931_s25, %s1058_s25   ;;  %s871_s24 = sphi %s929_s24, %s1057_s24  }
   0x4   : > { %s954_s30 = sadd.s32 1, %s883_s27   ;;  %s184_s8 = sadd.s32 1, %s879_s26 }
   0x5   : > { %s181_s9 = ssub.s32 %s883_s27, %s954_s30  ;;  %p194_p0 = scmp.ne.s32.totalorder %s879_s26, %s875_s25 }
   0x6   : > { %p182_p1 = scmp.eq.s32.totalorder %s181_s9, 0  ;;  %p195_p2 = scmp.eq.s32.totalorder %s950_s28, 1 }
   0x7   : > { %p200_p3 = scmp.ne.s32.totalorder %s875_s25, %s871_s24  ;;  %p201_p4 = scmp.eq.s32.totalorder %s729_s29, 1 }
   0x8   : > { %s965_s10 = scalar_select %p182_p1, %s879_s26, %s184_s8  }
   0x9   : > { %p967_p5 = por %p195_p2, %p194_p0  ;;  %p971_p6 = por %p201_p4, %p200_p3 }
   0xa   : > { %p732_p7 = scmp.ge.s32.totalorder %s883_s27, 1  ;;  %p250_p8 = scmp.lt.s32.totalorder %s883_s27, 3 }
   0xc   : > { %p251_p9 = pnand %p732_p7, %p250_p8 }
   0xd   : > { %p287_p10 = scmp.lt.s32.totalorder (!%p251_p9), %s950_s28, 1  ;;  %v885_v0 = vmov (!%p251_p9), 0.0   ;;  %v463_v1 = vld [vmem:[%s1051_s4] sm:$0xff] (!%p251_p9)  ;;  %v886_v2 = vmov (!%p251_p9), 0   ;;  %vm307_vm0 = vcmask (!%p251_p9), 1043456   ;;  %vm303_vm1 = vcmask (!%p251_p9), 31744  }
   0xe   : > { %254 = sbr.rel (%p251_p9) target bundleno = 1002 (0x3ea), region = 48  ;;  %376 = vmatprep.mubr.f32.mxu0 (!%p251_p9), %v885_v0  ;;  %759 = vmatprep.subr.mxu1 (!%p251_p9), %v885_v0  ;;  %v300_v7 = vld [vmem:[%s1050_s3] sm:$0xff] (!%p251_p9)  ;;  %vm887_vm2 = vmmov (!%p251_p9), 0   ;;  %vm478_vm3 = vcmask (!%p251_p9), 64512   ;;  %s284_s17 = sand.u32 (!%p251_p9), 1, %s875_s25  }
   0xf   : > { %813 = vset.pattern.permute.xlu0 (!%p251_p9), %v886_v2  ;;  %814 = vset.pattern.permute.xlu1 (!%p251_p9), %v886_v2  ;;  %v299_v8 = vld [vmem:[%s1049_s2] sm:$0xff] (!%p251_p9)  ;;  %s733_s18 = sshll.u32 (!%p251_p9), %s284_s17, 4  ;;  %s644_s8 = scalar_lea.sflag (!%p251_p9), [#allocation3], %s284_s17 }
  0x10   : > { %466 = vperm.xlu0 (!%p251_p9), %813, %v463_v1   ;;  %761 = vmatprep.mubr.msk.f32.mxu1 (!%p251_p9), %vm887_vm2, %v885_v0  ;;  %v477_v19 = vld [vmem:[%s1052_s5] sm:$0xff] (!%p251_p9)  ;;  %s286_s20 = scalar_lea.vmem (!%p251_p9), [#allocation2], %s733_s18 }
  0x11   : > { %v553_v23 = vld [vmem:[%s1053_s6] sm:$0xff] (!%p251_p9)  ;;  %s658_s21 = sshll.u32 (!%p251_p9), %s286_s20, 4  ;;  %s1007_s21 = int_to_ptr.vmem [resolvable:$true] %s658_s21 }
  0x12   : > { %s821_s9 = scalar_lea.vmem (!%p251_p9), %s1007_s21, 256 }
  0x13   : > { %p822_p11 = scmp.ne.s32.totalorder (!%p251_p9), %s1007_s21, %s821_s9 }
  0x15   : > { %s288_s15 = scalar_select %p287_p10, %s950_s28, 1 }
  0x16   : > { %p823_p12 = pnand %p822_p11, %p967_p5 }
  0x17   : > { %s752_s16 = sshll.u32 %s288_s15, 3 }
  0x18   : > { %s291_s19 = scalar_lea.vmem %s1047_s0, %s752_s16  ;;  %s296_s22 = scalar_lea.vmem %s1048_s1, %s752_s16 }
  0x19   : > { %v297_v3 = vld [vmem:[%s291_s19] sm:$0xff]  ;;  %s754_s19 = sshll.u32 %s950_s28, 8  ;;  %p824_p13 = pneg %p823_p12 }
  0x1a   : > { %v298_v4 = vld [vmem:[%s296_s22] sm:$0xff]  ;;  %v384_v6 = vcombine.high %v297_v3, %v297_v3  ;;  %s1005_s29 = scalar_lea.hbm %s1054_s7, %s754_s19  ;;  %s888_s28 = smov [#allocation2]  }
  0x1b   : > { %v302_v5 = vcombine.high %v298_v4, %v298_v4  ;;  %s825_s13 = sshll.u32 %s888_s28, 4  ;;  %s826_s13 = int_to_ptr.vmem [resolvable:$false] %s825_s13 }
  0x1c   : > { %s827_s14 = scalar_lea.vmem %s826_s13, 512  ;;  %p828_p0 = scmp.lt.s32.totalorder %s1007_s21, %s826_s13 }
  0x1d   : > { %738 = vmatprep.subr.msk.mxu0 %vm307_vm0, %v302_v5  ;;  %p829_p1 = scmp.lt.s32.totalorder %s827_s14, %s821_s9 }
  0x1e   : > { %739 = vmatpush1.msk.msra.mxu0 %vm307_vm0, %v298_v4 }
  0x1f   : > { %740 = vmatmul.mubr.msk.f32.vlgmr.msra.gmra.mrb[0].mxu0 %vm303_vm1, %v300_v7  ;;  %741 = vmatprep.subr.msk.mxu0 %vm307_vm0, %v384_v6  ;;  %p830_p2 = por %p829_p1, %p828_p0 }
  0x20   : > { %742 = vmatpush1.msk.msra.mxu0 %vm307_vm0, %v297_v3  ;;  %456 = vmatprep.mubr.f32.mxu0 %v885_v0 }
  0x21   : > { %p831_p3 = pnand %p830_p2, %p824_p13 }
  0x27   : > { %743 = vmatmul.mubr.msk.f32.vlgmr.msra.gmra.mrb[0].mxu0 %vm303_vm1, %v299_v8 }
  0x8f   : > { %v467_v9 = vpop.permute.xlu0 %466 }
  0xfa   : > { %v458_v10 = vpop.f32.mrb[0].mxu0 }
  0xfb   : > { %v469_v11 = vadd.f32 %v467_v9, %v458_v10  ;;  %v460_v12 = vpop.f32.mrb[1].mxu0 }
  0xfc   : > { %v470_v13 = vadd.f32 %v467_v9, %v460_v12 }
  0xfd   : > { %v471_v14 = vmax.f32 %v469_v11, 0.0 }
  0xfe   : > { %v472_v15 = vmax.f32 %v470_v13, 0.0 }
 0x100   : > { %v473_v16 = vadd.f32 %v472_v15, %v471_v14 }
 0x102   : > { %474 = vadd.xlane.f32.xlu0 %v473_v16 }
 0x18f   : > { %v475_v17 = vpop.xlane.xlu0 %474 }
 0x190   : > { %v476_v18 = vmul.f32 0.00390625, %v475_v17 }
 0x192   : > { %760 = vmatpush3.msra.mxu1 %v476_v18 }
 0x193   : > { %762 = vmatmul.mubr.msk.f32.vlgmr.msra.gmra.mrb[0].mxu1 %vm478_vm3, %v477_v19  ;;  %764 = vmatprep.subr.mxu1 %v885_v0 }
 0x194   : > { %766 = vmatprep.mubr.msk.f32.mxu1 %vm887_vm2, %v885_v0 }
 0x266   : > { %v548_v20 = vpop.f32.mrb[0].mxu1 }
 0x267   : > { %v552_v21 = vmax.f32 %v548_v20, 0.0  ;;  %v763_v22 = vpop.f32.mrb[1].mxu1 }
 0x269   : > { %765 = vmatpush3.msra.mxu1 %v552_v21 }
 0x26a   : > { %767 = vmatmul.mubr.msk.f32.vlgmr.msra.gmra.mrb[2].mxu1 %vm478_vm3, %v553_v23 }
 0x33d   : > { %v623_v24 = vpop.f32.mrb[2].mxu1 }
 0x33e   : > { %v746_v25 = vmul.f32 -1.442695, %v623_v24  ;;  %v768_v26 = vpop.f32.mrb[3].mxu1 }
 0x340   : > { %817 = vpow2.f32 %v746_v25 }
 0x34a   : > { %v818_v27 = vpop.eup %817 }
 0x34b   : > { %v630_v28 = vadd.f32 1.0, %v818_v27 }
 0x34d   : > { %819 = vrcp.f32 %v630_v28 }
 0x357   : > { %v820_v29 = vpop.eup %819 }
 0x358   : > { %v633_v30 = vadd.f32 1.0, %v820_v29 }
 0x35a   : > { %636 = vperm.xlu1 %814, %v633_v30  }
 0x3d9   : > { %v637_v31 = vpop.permute.xlu1 %636 }
 0x3da   : > { %v639_v32 = vmul.f32 %v637_v31, %v471_v14  ;;  %v640_v33 = vmul.f32 %v637_v31, %v472_v15 }
 0x3dc   : > { %641 = vst [vmem:[%s286_s20] sm:$0xff] %v639_v32  ;;  %642 = vst [vmem:[%s286_s20 + $0x8] sm:$0xff] %v640_v33 }
 0x3dd   : > { %834 = shalt.err (!%p831_p3)
}
 0x3de   : > { %s835_s15 = scalar_lea.hbm %s1005_s29, 256  ;;  %s839_s18 = scalar_lea.hbm %s1054_s7, 512 }
 0x3df   : > { %p836_p4 = scmp.ne.s32.totalorder %s1005_s29, %s835_s15  ;;  %p840_p9 = scmp.lt.u32.totalorder %s1005_s29, %s1054_s7 }
 0x3e0   : > { %p841_p10 = scmp.lt.u32.totalorder %s839_s18, %s835_s15  ;;  %p843_p12 = scmp.lt.u32.totalorder %s835_s15, %s1005_s29 }
 0x3e1   : > { %p837_p7 = pnand %p836_p4, %p967_p5 }
 0x3e2   : > { %p842_p11 = por %p841_p10, %p840_p9 }
 0x3e3   : > { %p838_p8 = pneg %p837_p7 }
 0x3e4   : > { %p844_p13 = por %p843_p12, %p842_p11 }
 0x3e6   : > { %p845_p0 = pnand %p844_p13, %p838_p8 }
 0x3e8   : > { %848 = shalt.err (!%p845_p0)
}
 0x3e9   : > { %771 = dma.vmem_to_hbm [thread:$0]  (%p967_p5), %s1007_s21, 256, %s1005_s29, %s644_s8  }
 0x3ea PF: > { %p777_p1 = scmp.ge.s32.totalorder %s883_s27, 2  ;;  %s670_s22 = sand.u32 1, %s871_s24  }
 0x3eb   : > { %s671_s23 = scalar_lea.sflag [#allocation3], %s670_s22 }
 0x3ec   : > { %p774_p2 = pnand %p777_p1, %p971_p6 }
 0x3ee   : > { %866 = dma.done.wait (!%p774_p2), %s671_s23, 256  }
 0x3ef   : > { %868 = vsyncadd (!%p774_p2), %s671_s23, 4294967040  ;;  %p17_p3 = scmp.ge.s32.totalorder %s954_s30, 4   ;;  %s1057_s24 = smov %s875_s25 }
 0x3f0   : > { %s1058_s25 = smov %s879_s26  ;;  %s1059_s26 = smov %s965_s10 }
 0x3f1   : > { %s1060_s27 = smov %s954_s30  ;;  %19 = sbr.rel (!%p17_p3) target bundleno = 3 (0x3), region = 86 }
 0x3f8   :  { %676 = vsyncpa [#allocation3], 1 }
 0x3f9   :  { %678 = vsyncpa [#allocation3 + $0x1], 1 }

</bundles_post_ra>
